<compile_context>
chip_gen: v7x
topology: tpu7x:2x2x1
jax: 0.10.0
libtpu: 0.0.40
codegen_flags: <defaults>
</compile_context>

<pallas_src>
import functools

import jax
import jax.numpy as jnp
from jax.experimental import pallas as pl
from jax.experimental.pallas import tpu as pltpu


def _fold_rows(x):
    """Fold (R, N) -> (8, N) with pure VPU adds (R is a multiple of 8)."""
    r, n = x.shape
    return jnp.sum(x.reshape(r // 8, 8, n), axis=0)


def _l1kl_kernel(p_ref, t_ref, out_ref, acc_ref, *, n_rows, alpha, beta,
                 inv_scale, row_tile, steps_per_slice, first_partial_block,
                 any_padding):
    i = pl.program_id(1)          # step within this slice ("arbitrary" axis)

    @pl.when(i == 0)
    def _():
        acc_ref[...] = jnp.zeros_like(acc_ref)

    p = p_ref[...].astype(jnp.float32)
    t = t_ref[...].astype(jnp.float32)

    # Numerically-stable logsumexp over the lane axis for preds (only the
    # per-row lse is needed; p_lp is never materialized).
    p_max = jnp.max(p, axis=-1, keepdims=True)
    p_lse = p_max + jnp.log(jnp.sum(jnp.exp(p - p_max), axis=-1, keepdims=True))

    # ... and for targets; e_t is reused as the softmax(t) numerator.
    t_max = jnp.max(t, axis=-1, keepdims=True)
    e_t = jnp.exp(t - t_max)
    s_t = jnp.sum(e_t, axis=-1, keepdims=True)
    t_lse = t_max + jnp.log(s_t)
    softmax_t = e_t / s_t                       # == exp(t_lp), no extra exp

    d = p - t
    l1_c = jnp.abs(d)                           # L1 numerator
    kl_c = softmax_t * ((p_lse - t_lse) - d)    # KLDiv(log_target=True) numerator

    if alpha == 1.0 and beta == 1.0:
        contrib = l1_c + kl_c
    else:
        contrib = alpha * l1_c + beta * kl_c

    if any_padding:
        logical_block = pl.program_id(0) * steps_per_slice + i
        needs_mask = logical_block >= first_partial_block

        @pl.when(jnp.logical_not(needs_mask))
        def _():                                 # steady state: no mask ops
            acc_ref[...] += _fold_rows(contrib)

        @pl.when(needs_mask)
        def _():                                 # ragged / clamped-dup blocks only
            rid = jax.lax.broadcasted_iota(jnp.int32, (row_tile, 1), 0)
            valid = (logical_block * row_tile + rid) < n_rows
            # select (not multiply) so NaN/Inf in padded rows cannot propagate
            acc_ref[...] += _fold_rows(jnp.where(valid, contrib, 0.0))
    else:
        acc_ref[...] += _fold_rows(contrib)

    @pl.when(i == steps_per_slice - 1)
    def _():
        total = jnp.sum(acc_ref[...]) * inv_scale     # one XLU reduce per slice
        out_ref[...] = jnp.broadcast_to(total, (8, 128)).astype(jnp.float32)


def _device_kind():
    try:
        return jax.devices()[0].device_kind.lower()
    except Exception:
        return ""


def _choose_row_tile(B, N, itemsize, block_budget_bytes):
    # Per streamed row: 2 inputs x 2 pipeline buffers in the input dtype, plus
    # ~6 live f32 compute intermediates (matters on v7x's 32 MiB scoped VMEM,
    # especially with bf16 inputs where intermediates are 2x the block size).
    bytes_per_row = N * (4 * itemsize + 6 * 4)
    max_rows_budget = max(8, block_budget_bytes // bytes_per_row)
    # ~4 MiB per input block: measured >=86% of HBM roofline at 2-4 MiB tiles,
    # and the ~0.35us/grid-step overhead vanishes.  No hard row cap beyond the
    # byte budget.
    target_rows = max(8, (4 * 1024 * 1024) // (N * itemsize))
    rows = min(max_rows_budget, target_rows)
    rows = min(rows, ((B + 7) // 8) * 8)          # never bigger than padded batch
    return max(8, (rows // 8) * 8)


def l1kl_mixed(preds, targets, *, alpha=1.0, beta=1.0, row_tile=None,
               num_slices=None):
    """Pallas implementation of L1KLmixed.forward with reduction='mean'.

    The kernel is HBM-bandwidth bound on v5e/v6e: keep inputs bf16 in HBM if
    possible (they are upcast to f32 inside the kernel), which roughly halves
    wall-clock there.
    """
    assert preds.shape == targets.shape and preds.ndim == 2
    assert (float(alpha) + float(beta)) != 0.0, "alpha + beta must be non-zero"
    B, N = preds.shape
    itemsize = max(jnp.dtype(preds.dtype).itemsize, jnp.dtype(targets.dtype).itemsize)

    kind = _device_kind()
    big_vmem = ("v5" in kind) or ("v6" in kind)           # 128 MiB VMEM parts
    vmem_limit = (64 if big_vmem else 32) * 1024 * 1024
    block_budget = (48 if big_vmem else 20) * 1024 * 1024

    if num_slices is None:
        # v7x has 2 TensorCores per chip; engage both via a parallel grid axis.
        num_slices = 2 if ("v7" in kind) else 1

    if row_tile is None:
        row_tile = _choose_row_tile(B, N, itemsize, block_budget)
    row_tile = max(8, (int(row_tile) // 8) * 8)

    num_blocks = -(-B // row_tile)
    num_slices = max(1, min(int(num_slices), num_blocks))
    steps_per_slice = -(-num_blocks // num_slices)
    total_blocks = num_slices * steps_per_slice
    # first logical block that contains any padded / invalid rows
    first_partial_block = (B // row_tile) if (B % row_tile) else num_blocks
    any_padding = (B % row_tile != 0) or (total_blocks > num_blocks)
    last_block = num_blocks - 1

    kernel = functools.partial(
        _l1kl_kernel,
        n_rows=B,
        alpha=float(alpha),
        beta=float(beta),
        inv_scale=float(1.0 / (B * N * (float(alpha) + float(beta)))),
        row_tile=row_tile,
        steps_per_slice=steps_per_slice,
        first_partial_block=first_partial_block,
        any_padding=any_padding,
    )

    def in_map(s, i):
        # Clamp so a slice's trailing (duplicate) blocks never issue an OOB DMA;
        # their rows are fully masked in the kernel.
        return (jnp.minimum(s * steps_per_slice + i, last_block), 0)

    out = pl.pallas_call(
        kernel,
        out_shape=jax.ShapeDtypeStruct((num_slices * 8, 128), jnp.float32),
        grid_spec=pltpu.PrefetchScalarGridSpec(
            num_scalar_prefetch=0,
            grid=(num_slices, steps_per_slice),
            in_specs=[
                pl.BlockSpec((row_tile, N), in_map),
                pl.BlockSpec((row_tile, N), in_map),
            ],
            out_specs=pl.BlockSpec((8, 128), lambda s, i: (s, 0)),
            scratch_shapes=[pltpu.VMEM((8, N), jnp.float32)],
        ),
        compiler_params=pltpu.CompilerParams(
            dimension_semantics=("parallel", "arbitrary"),
            vmem_limit_bytes=vmem_limit,
        ),
    )(preds, targets)

    # one scalar partial per slice -> final result
    return jnp.sum(out.reshape(num_slices, 8, 128)[:, 0, 0])


def _reference(preds, targets, alpha=1.0, beta=1.0):
    p = preds.astype(jnp.float32)
    t = targets.astype(jnp.float32)
    p_lp = p - jax.scipy.special.logsumexp(p, axis=-1, keepdims=True)
    t_lp = t - jax.scipy.special.logsumexp(t, axis=-1, keepdims=True)
    l1 = jnp.mean(jnp.abs(p - t))
    kl = jnp.mean(jnp.exp(t_lp) * (t_lp - p_lp))
    return (alpha * l1 + beta * kl) / (alpha + beta)


if __name__ == "__main__":
    key = jax.random.PRNGKey(0)
    k1, k2 = jax.random.split(key)
    B, N = 37, 128  # B deliberately not a multiple of the tile -> tail masking
    preds = jax.random.normal(k1, (B, N), dtype=jnp.float32)
    targets = jax.random.normal(k2, (B, N), dtype=jnp.float32)

    ref = _reference(preds, targets)

    # production path: auto-sized row tile / auto slice count
    out = jax.block_until_ready(l1kl_mixed(preds, targets, alpha=1.0, beta=1.0))
    assert jnp.allclose(out, ref, rtol=1e-5, atol=1e-5), (out, ref)

    # small explicit tile: multi-step accumulation + hoisted tail masking
    out2 = jax.block_until_ready(
        l1kl_mixed(preds, targets, alpha=1.0, beta=1.0, row_tile=16))
    assert jnp.allclose(out2, ref, rtol=1e-5, atol=1e-5), (out2, ref)

    # force the dual-slice (v7x dual-TensorCore) layout incl. clamped duplicate
    # blocks; runs (sequentially) on any chip.
    out3 = jax.block_until_ready(
        l1kl_mixed(preds, targets, alpha=1.0, beta=1.0, row_tile=16, num_slices=2))
    assert jnp.allclose(out3, ref, rtol=1e-5, atol=1e-5), (out3, ref)

    # non-unit alpha/beta weighting path
    out4 = jax.block_until_ready(l1kl_mixed(preds, targets, alpha=2.0, beta=0.5))
    ref4 = _reference(preds, targets, alpha=2.0, beta=0.5)
    assert jnp.allclose(out4, ref4, rtol=1e-5, atol=1e-5), (out4, ref4)

    print("KERNEL_OK")
</pallas_src>

<mosaic_0001>
module attributes {stable_mosaic.version = 11 : i64} {
  func.func @_l1kl_kernel(%arg0: i32, %arg1: i32, %arg2: memref<40x128xf32, #tpu.memory_space<vmem>>, %arg3: memref<40x128xf32, #tpu.memory_space<vmem>>, %arg4: memref<8x128xf32, #tpu.memory_space<vmem>>, %arg5: memref<8x128xf32, #tpu.memory_space<vmem>>) attributes {dimension_semantics = [#tpu.dimension_semantics<parallel>, #tpu.dimension_semantics<arbitrary>], iteration_bounds = array<i64: 1, 1>, scalar_prefetch = 0 : i64, scratch_operands = 1 : i64, tpu.core_type = #tpu.core_type<tc>, window_params = [{transform_indices = @transform_0, window_bounds = array<i64: 40, 128>}, {transform_indices = @transform_1, window_bounds = array<i64: 40, 128>}, {transform_indices = @transform_2, window_bounds = array<i64: 8, 128>}]} {
    %c0_i32 = arith.constant 0 : i32
    %0 = arith.cmpi eq, %arg1, %c0_i32 : i32
    %1 = arith.extui %0 : i1 to i32
    %c0_i32_0 = arith.constant 0 : i32
    %2 = arith.cmpi ne, %1, %c0_i32_0 : i32
    scf.if %2 {
      %cst_12 = arith.constant 0.000000e+00 : f32
      %43 = vector.broadcast %cst_12 : f32 to vector<8x128xf32>
      %c0_13 = arith.constant 0 : index
      %c0_14 = arith.constant 0 : index
      %44 = vector.load %arg5[%c0_13, %c0_14] : memref<8x128xf32, #tpu.memory_space<vmem>>, vector<8x128xf32>
      tpu.vector_store %arg5[%c0_13, %c0_14], %43 {strides = array<i32>} : memref<8x128xf32, #tpu.memory_space<vmem>>, vector<8x128xf32>,
    } else {
    }
    %c0 = arith.constant 0 : index
    %c0_1 = arith.constant 0 : index
    %3 = vector.load %arg2[%c0, %c0_1] : memref<40x128xf32, #tpu.memory_space<vmem>>, vector<40x128xf32>
    %c0_2 = arith.constant 0 : index
    %c0_3 = arith.constant 0 : index
    %4 = vector.load %arg3[%c0_2, %c0_3] : memref<40x128xf32, #tpu.memory_space<vmem>>, vector<40x128xf32>
    %cst = arith.constant dense<0xFF800000> : vector<40xf32>
    %5 = vector.multi_reduction <maximumf>, %3, %cst [1] : vector<40x128xf32> to vector<40xf32>
    %6 = vector.shape_cast %5 : vector<40xf32> to vector<40x1xf32>
    %7 = vector.broadcast %6 : vector<40x1xf32> to vector<40x128xf32>
    %8 = arith.subf %3, %7 : vector<40x128xf32>
    %9 = math.exp %8 : vector<40x128xf32>
    %cst_4 = arith.constant dense<0.000000e+00> : vector<40xf32>
    %10 = vector.multi_reduction <add>, %9, %cst_4 [1] : vector<40x128xf32> to vector<40xf32>
    %11 = vector.shape_cast %10 : vector<40xf32> to vector<40x1xf32>
    %12 = math.log %11 : vector<40x1xf32>
    %13 = arith.addf %6, %12 : vector<40x1xf32>
    %cst_5 = arith.constant dense<0xFF800000> : vector<40xf32>
    %14 = vector.multi_reduction <maximumf>, %4, %cst_5 [1] : vector<40x128xf32> to vector<40xf32>
    %15 = vector.shape_cast %14 : vector<40xf32> to vector<40x1xf32>
    %16 = vector.broadcast %15 : vector<40x1xf32> to vector<40x128xf32>
    %17 = arith.subf %4, %16 : vector<40x128xf32>
    %18 = math.exp %17 : vector<40x128xf32>
    %cst_6 = arith.constant dense<0.000000e+00> : vector<40xf32>
    %19 = vector.multi_reduction <add>, %18, %cst_6 [1] : vector<40x128xf32> to vector<40xf32>
    %20 = vector.shape_cast %19 : vector<40xf32> to vector<40x1xf32>
    %21 = math.log %20 : vector<40x1xf32>
    %22 = arith.addf %15, %21 : vector<40x1xf32>
    %23 = vector.broadcast %20 : vector<40x1xf32> to vector<40x128xf32>
    %24 = arith.divf %18, %23 : vector<40x128xf32>
    %25 = arith.subf %3, %4 : vector<40x128xf32>
    %26 = math.absf %25 : vector<40x128xf32>
    %27 = arith.subf %13, %22 : vector<40x1xf32>
    %28 = vector.broadcast %27 : vector<40x1xf32> to vector<40x128xf32>
    %29 = arith.subf %28, %25 : vector<40x128xf32>
    %30 = arith.mulf %24, %29 : vector<40x128xf32>
    %31 = arith.addf %26, %30 : vector<40x128xf32>
    %c1_i32 = arith.constant 1 : i32
    %32 = arith.muli %arg0, %c1_i32 : i32
    %33 = arith.addi %32, %arg1 : i32
    %c0_i32_7 = arith.constant 0 : i32
    %34 = arith.cmpi sge, %33, %c0_i32_7 : i32
    %true = arith.constant true
    %35 = arith.xori %34, %true : i1
    %36 = arith.extui %35 : i1 to i32
    %c0_i32_8 = arith.constant 0 : i32
    %37 = arith.cmpi ne, %36, %c0_i32_8 : i32
    scf.if %37 {
      %c0_12 = arith.constant 0 : index
      %c0_13 = arith.constant 0 : index
      %43 = vector.load %arg5[%c0_12, %c0_13] : memref<8x128xf32, #tpu.memory_space<vmem>>, vector<8x128xf32>
      %44 = vector.shape_cast %31 : vector<40x128xf32> to vector<5x8x128xf32>
      %cst_14 = arith.constant dense<0.000000e+00> : vector<8x128xf32>
      %45 = vector.multi_reduction <add>, %44, %cst_14 [0] : vector<5x8x128xf32> to vector<8x128xf32>
      %46 = arith.addf %43, %45 : vector<8x128xf32>
      %c0_15 = arith.constant 0 : index
      %c0_16 = arith.constant 0 : index
      %47 = vector.load %arg5[%c0_15, %c0_16] : memref<8x128xf32, #tpu.memory_space<vmem>>, vector<8x128xf32>
      tpu.vector_store %arg5[%c0_15, %c0_16], %46 {strides = array<i32>} : memref<8x128xf32, #tpu.memory_space<vmem>>, vector<8x128xf32>,
    } else {
    }
    %38 = arith.extui %34 : i1 to i32
    %c0_i32_9 = arith.constant 0 : i32
    %39 = arith.cmpi ne, %38, %c0_i32_9 : i32
    scf.if %39 {
      %43 = tpu.iota {dimensions = array<i32: 0>} : vector<40x1xi32>
      %c40_i32 = arith.constant 40 : i32
      %44 = arith.muli %33, %c40_i32 : i32
      %45 = vector.broadcast %44 : i32 to vector<40x1xi32>
      %46 = arith.addi %45, %43 : vector<40x1xi32>
      %c37_i32 = arith.constant 37 : i32
      %47 = vector.broadcast %c37_i32 : i32 to vector<40x1xi32>
      %48 = arith.cmpi slt, %46, %47 : vector<40x1xi32>
      %c0_12 = arith.constant 0 : index
      %c0_13 = arith.constant 0 : index
      %49 = vector.load %arg5[%c0_12, %c0_13] : memref<8x128xf32, #tpu.memory_space<vmem>>, vector<8x128xf32>
      %cst_14 = arith.constant 0.000000e+00 : f32
      %50 = vector.shape_cast %48 : vector<40x1xi1> to vector<40x1xi1>
      %51 = vector.broadcast %50 : vector<40x1xi1> to vector<40x128xi1>
      %52 = vector.broadcast %cst_14 : f32 to vector<40x128xf32>
      %53 = arith.select %51, %31, %52 : vector<40x128xi1>, vector<40x128xf32>
      %54 = vector.shape_cast %53 : vector<40x128xf32> to vector<5x8x128xf32>
      %cst_15 = arith.constant dense<0.000000e+00> : vector<8x128xf32>
      %55 = vector.multi_reduction <add>, %54, %cst_15 [0] : vector<5x8x128xf32> to vector<8x128xf32>
      %56 = arith.addf %49, %55 : vector<8x128xf32>
      %c0_16 = arith.constant 0 : index
      %c0_17 = arith.constant 0 : index
      %57 = vector.load %arg5[%c0_16, %c0_17] : memref<8x128xf32, #tpu.memory_space<vmem>>, vector<8x128xf32>
      tpu.vector_store %arg5[%c0_16, %c0_17], %56 {strides = array<i32>} : memref<8x128xf32, #tpu.memory_space<vmem>>, vector<8x128xf32>,
    } else {
    }
    %c0_i32_10 = arith.constant 0 : i32
    %40 = arith.cmpi eq, %arg1, %c0_i32_10 : i32
    %41 = arith.extui %40 : i1 to i32
    %c0_i32_11 = arith.constant 0 : i32
    %42 = arith.cmpi ne, %41, %c0_i32_11 : i32
    scf.if %42 {
      %c0_12 = arith.constant 0 : index
      %c0_13 = arith.constant 0 : index
      %43 = vector.load %arg5[%c0_12, %c0_13] : memref<8x128xf32, #tpu.memory_space<vmem>>, vector<8x128xf32>
      %44 = vector.shape_cast %43 : vector<8x128xf32> to vector<1x8x128xf32>
      %cst_14 = arith.constant dense<0.000000e+00> : vector<1xf32>
      %45 = vector.multi_reduction <add>, %44, %cst_14 [1, 2] : vector<1x8x128xf32> to vector<1xf32>
      %46 = vector.shape_cast %45 : vector<1xf32> to vector<1x1x1xf32>
      %47 = vector.extract %46[0, 0, 0] : f32 from vector<1x1x1xf32>
      %cst_15 = arith.constant 1.05574327E-4 : f32
      %48 = arith.mulf %47, %cst_15 : f32
      %49 = vector.broadcast %48 : f32 to vector<8x128xf32>
      %c0_16 = arith.constant 0 : index
      %c0_17 = arith.constant 0 : index
      %50 = vector.load %arg4[%c0_16, %c0_17] : memref<8x128xf32, #tpu.memory_space<vmem>>, vector<8x128xf32>
      tpu.vector_store %arg4[%c0_16, %c0_17], %49 {strides = array<i32>} : memref<8x128xf32, #tpu.memory_space<vmem>>, vector<8x128xf32>,
    } else {
    }
    return
  }
  func.func @transform_0(%arg0: i32, %arg1: i32) -> (i32, i32) {
    %c1_i32 = arith.constant 1 : i32
    %0 = arith.muli %arg0, %c1_i32 : i32
    %1 = arith.addi %0, %arg1 : i32
    %c0_i32 = arith.constant 0 : i32
    %2 = arith.minsi %1, %c0_i32 : i32
    %c0_i32_0 = arith.constant 0 : i32
    %c0_i32_1 = arith.constant 0 : i32
    return %2, %c0_i32_0 : i32, i32
  }
  func.func @transform_1(%arg0: i32, %arg1: i32) -> (i32, i32) {
    %c1_i32 = arith.constant 1 : i32
    %0 = arith.muli %arg0, %c1_i32 : i32
    %1 = arith.addi %0, %arg1 : i32
    %c0_i32 = arith.constant 0 : i32
    %2 = arith.minsi %1, %c0_i32 : i32
    %c0_i32_0 = arith.constant 0 : i32
    %c0_i32_1 = arith.constant 0 : i32
    return %2, %c0_i32_0 : i32, i32
  }
  func.func @transform_2(%arg0: i32, %arg1: i32) -> (i32, i32) {
    %c0_i32 = arith.constant 0 : i32
    %c0_i32_0 = arith.constant 0 : i32
    return %arg0, %c0_i32 : i32, i32
  }
}

</mosaic_0001>

<bundles_post_ra>
// kernel: tpu_custom_call.1
= control target key start
LH: loop header
LB: loop body
LE: loop exit
PB: predicated region body
PF: predicated region fallthrough
CT: control target
= control target key end

     0   :  { %7 = vsyncpa [#allocation4], 0  ;;  %s602_s0 = inlined_call_operand.hbm [shape: f32[37,128], index: 0, kind: input, shape index: {}]   ;;  %s603_s1 = inlined_call_operand.hbm [shape: f32[37,128], index: 1, kind: input, shape index: {}]   ;;  %s604_s2 = inlined_call_operand.hbm [shape: f32[8,128], index: 2, kind: output, shape index: {}]  }
   0x1   :  { %8 = vsyncpa [#allocation7], 0 }
   0x2   :  { %9 = vsyncpa [#allocation5], 0  ;;  %s436_s9 = smov [#allocation3]   ;;  %s364_s13 = scalar_lea.hbm %s602_s0, 640 }
   0x3   :  { %s21_s10 = sshll.u32 %s436_s9, 4  ;;  %p365_p0 = scmp.ne.s32.totalorder %s602_s0, %s364_s13  ;;  %s22_s10 = int_to_ptr.vmem [resolvable:$true] %s21_s10 }
   0x4   :  { %p368_p1 = scmp.lt.u32.totalorder %s364_s13, %s602_s0 }
   0x6   :  { %p370_p2 = pnand %p368_p1, %p365_p0 }
   0x8   :  { %373 = shalt.err (!%p370_p2)
}
   0x9   :  { %s374_s18 = scalar_lea.vmem %s22_s10, 640  ;;  %p379_p4 = scmp.lt.s32.totalorder %s22_s10, %s22_s10 }
   0xa   :  { %p375_p3 = scmp.ne.s32.totalorder %s22_s10, %s374_s18  ;;  %p380_p5 = scmp.lt.s32.totalorder %s374_s18, %s374_s18 }
   0xc   :  { %p381_p6 = por %p380_p5, %p379_p4 }
   0xe   :  { %p382_p7 = pnand %p381_p6, %p375_p3 }
  0x10   :  { %385 = shalt.err (!%p382_p7)
}
  0x11   :  { %s437_s19 = smov 128   ;;  %s438_s20 = smov 8  }
  0x12   :  { %27 = dma.hbm_to_vmem [thread:$0]  %s602_s0, 640, %s22_s10, [#allocation4], %s437_s19, %s437_s19, %s438_s20  }
  0x13   :  { %s439_s23 = smov [#allocation6]   ;;  %s386_s27 = scalar_lea.hbm %s603_s1, 640 }
  0x14   :  { %s39_s24 = sshll.u32 %s439_s23, 4  ;;  %p387_p8 = scmp.ne.s32.totalorder %s603_s1, %s386_s27  ;;  %s40_s24 = int_to_ptr.vmem [resolvable:$true] %s39_s24 }
  0x15   :  { %p390_p9 = scmp.lt.u32.totalorder %s386_s27, %s603_s1 }
  0x17   :  { %p392_p10 = pnand %p390_p9, %p387_p8 }
  0x19   :  { %395 = shalt.err (!%p392_p10)
}
  0x1a   :  { %s396_s4 = scalar_lea.vmem %s40_s24, 640  ;;  %p401_p12 = scmp.lt.s32.totalorder %s40_s24, %s40_s24 }
  0x1b   :  { %p397_p11 = scmp.ne.s32.totalorder %s40_s24, %s396_s4  ;;  %p402_p13 = scmp.lt.s32.totalorder %s396_s4, %s396_s4 }
  0x1d   :  { %p403_p0 = por %p402_p13, %p401_p12 }
  0x1f   :  { %p404_p1 = pnand %p403_p0, %p397_p11 }
  0x21   :  { %407 = shalt.err (!%p404_p1)
}
  0x22   :  { %45 = dma.hbm_to_vmem [thread:$0]  %s603_s1, 640, %s40_s24, [#allocation7], %s437_s19, %s437_s19, %s438_s20  }
  0x23   :  { %430 = dma.done.wait [#allocation4], 640  }
  0x24   :  { %431 = vsyncadd [#allocation4], 4294966656 }
  0x25   :  { %432 = dma.done.wait [#allocation7], 640  }
  0x26   :  { %433 = vsyncadd [#allocation7], 4294966656  ;;  %v480_v0 = vld [vmem:[#allocation3] sm:$0xff]  ;;  %v482_v1 = vld [vmem:[#allocation6] sm:$0xff]  ;;  %s440_s1 = smov [#allocation8]  }
  0x27   :  { %75 = vmax.xlane.f32.xlu0 %v480_v0  ;;  %125 = vmax.xlane.f32.xlu1 %v482_v1  ;;  %v486_v2 = vld [vmem:[#allocation3 + $0x8] sm:$0xff]  ;;  %v488_v3 = vld [vmem:[#allocation6 + $0x8] sm:$0xff]  ;;  %v494_v5 = vld [vmem:[#allocation6 + $0x10] sm:$0xff]  ;;  %s293_s6 = sshll.u32 %s440_s1, 4  ;;  %s294_s6 = int_to_ptr.vmem [resolvable:$true] %s293_s6 }
  0x28   :  { %v492_v4 = vld [vmem:[#allocation3 + $0x10] sm:$0xff]  ;;  %v498_v6 = vld [vmem:[#allocation3 + $0x18] sm:$0xff]  ;;  %v500_v7 = vld [vmem:[#allocation6 + $0x18] sm:$0xff]  ;;  %s408_s9 = scalar_lea.vmem %s294_s6, 128  ;;  %p413_p3 = scmp.lt.s32.totalorder %s294_s6, %s294_s6 }
  0x29   :  { %v504_v8 = vld [vmem:[#allocation3 + $0x20] sm:$0xff]  ;;  %v506_v9 = vld [vmem:[#allocation6 + $0x20] sm:$0xff]  ;;  %p409_p2 = scmp.ne.s32.totalorder %s294_s6, %s408_s9  ;;  %p414_p4 = scmp.lt.s32.totalorder %s408_s9, %s408_s9 }
  0x2b   :  { %77 = vmax.xlane.f32.xlu0 %v486_v2  ;;  %127 = vmax.xlane.f32.xlu1 %v488_v3  ;;  %p415_p5 = por %p414_p4, %p413_p3 }
  0x2d   :  { %p416_p6 = pnand %p415_p5, %p409_p2 }
  0x2f   :  { %79 = vmax.xlane.f32.xlu0 %v492_v4  ;;  %129 = vmax.xlane.f32.xlu1 %v494_v5 }
  0x33   :  { %81 = vmax.xlane.f32.xlu0 %v498_v6  ;;  %131 = vmax.xlane.f32.xlu1 %v500_v7 }
  0x37   :  { %83 = vmax.xlane.f32.xlu0 %v504_v8  ;;  %133 = vmax.xlane.f32.xlu1 %v506_v9 }
  0xb4   :  { %v510_v10 = vpop.xlane.xlu0 %75  ;;  %v512_v11 = vpop.xlane.xlu1 %125 }
  0xb5   :  { %v85_v12 = vsub.f32 %v480_v0, %v510_v10  ;;  %v135_v13 = vsub.f32 %v482_v1, %v512_v11 }
  0xb7   :  { %v90_v14 = vmul.f32 1.442695, %v85_v12  ;;  %v140_v15 = vmul.f32 1.442695, %v135_v13 }
  0xb8   :  { %v518_v16 = vpop.xlane.xlu0 %77  ;;  %v520_v17 = vpop.xlane.xlu1 %127 }
  0xb9   :  { %314 = vpow2.f32 %v90_v14  ;;  %v86_v18 = vsub.f32 %v486_v2, %v518_v16  ;;  %v136_v19 = vsub.f32 %v488_v3, %v520_v17 }
  0xba   :  { %316 = vpow2.f32 %v140_v15 }
  0xbb   :  { %v92_v20 = vmul.f32 1.442695, %v86_v18  ;;  %v142_v21 = vmul.f32 1.442695, %v136_v19 }
  0xbc   :  { %v526_v22 = vpop.xlane.xlu0 %79  ;;  %v528_v23 = vpop.xlane.xlu1 %129 }
  0xbd   :  { %318 = vpow2.f32 %v92_v20  ;;  %v87_v24 = vsub.f32 %v492_v4, %v526_v22  ;;  %v137_v25 = vsub.f32 %v494_v5, %v528_v23 }
  0xbe   :  { %320 = vpow2.f32 %v142_v21 }
  0xbf   :  { %v94_v26 = vmul.f32 1.442695, %v87_v24  ;;  %v144_v27 = vmul.f32 1.442695, %v137_v25 }
  0xc0   :  { %v534_v28 = vpop.xlane.xlu0 %81  ;;  %v536_v29 = vpop.xlane.xlu1 %131 }
  0xc1   :  { %322 = vpow2.f32 %v94_v26  ;;  %v88_v30 = vsub.f32 %v498_v6, %v534_v28  ;;  %v138_v31 = vsub.f32 %v500_v7, %v536_v29  ;;  %v186_v26 = vsub.f32 %v486_v2, %v488_v3 }
  0xc2   :  { %324 = vpow2.f32 %v144_v27 }
  0xc3   :  { %v315_v32 = vpop.eup %314  ;;  %v96_v33 = vmul.f32 1.442695, %v88_v30  ;;  %v146_v34 = vmul.f32 1.442695, %v138_v31 }
  0xc4   :  { %100 = vadd.xlane.f32.xlu0 %v315_v32  ;;  %v542_v35 = vpop.xlane.xlu0 %83  ;;  %v544_v36 = vpop.xlane.xlu1 %133 }
  0xc5   :  { %v546_v37 = vpop.eup %316  ;;  %326 = vpow2.f32 %v96_v33  ;;  %v89_v38 = vsub.f32 %v504_v8, %v542_v35  ;;  %v139_v39 = vsub.f32 %v506_v9, %v544_v36 }
  0xc6   :  { %328 = vpow2.f32 %v146_v34  ;;  %v185_v34 = vsub.f32 %v480_v0, %v482_v1  ;;  %v188_v0 = vsub.f32 %v498_v6, %v500_v7 }
  0xc7   :  { %v319_v40 = vpop.eup %318  ;;  %v98_v41 = vmul.f32 1.442695, %v89_v38  ;;  %v148_v42 = vmul.f32 1.442695, %v139_v39 }
  0xc8   :  { %150 = vadd.xlane.f32.xlu0 %v546_v37  ;;  %102 = vadd.xlane.f32.xlu1 %v319_v40  ;;  %v553_v43 = vpop.eup %320 }
  0xc9   :  { %330 = vpow2.f32 %v98_v41 }
  0xca   :  { %332 = vpow2.f32 %v148_v42 }
  0xcb   :  { %v323_v44 = vpop.eup %322 }
  0xcc   :  { %152 = vadd.xlane.f32.xlu1 %v553_v43  ;;  %104 = vadd.xlane.f32.xlu0 %v323_v44  ;;  %v556_v45 = vpop.eup %324 }
  0xcf   :  { %v327_v46 = vpop.eup %326 }
  0xd0   :  { %154 = vadd.xlane.f32.xlu1 %v556_v45  ;;  %106 = vadd.xlane.f32.xlu0 %v327_v46  ;;  %v559_v47 = vpop.eup %328 }
  0xd3   :  { %v331_v48 = vpop.eup %330 }
  0xd4   :  { %156 = vadd.xlane.f32.xlu1 %v559_v47  ;;  %108 = vadd.xlane.f32.xlu0 %v331_v48  ;;  %v562_v49 = vpop.eup %332  ;;  %v231_v48 = vlaneseq }
  0xd8   :  { %158 = vadd.xlane.f32.xlu1 %v562_v49 }
 0x151   :  { %v101_v50 = vpop.xlane.xlu0 %100 }
 0x152   :  { %334 = vlog2.f32 %v101_v50 }
 0x155   :  { %v103_v51 = vpop.xlane.xlu1 %102  ;;  %v151_v52 = vpop.xlane.xlu0 %150 }
 0x156   :  { %336 = vlog2.f32 %v103_v51 }
 0x157   :  { %338 = vlog2.f32 %v151_v52 }
 0x159   :  { %v153_v53 = vpop.xlane.xlu1 %152  ;;  %v105_v54 = vpop.xlane.xlu0 %104 }
 0x15a   :  { %340 = vlog2.f32 %v153_v53 }
 0x15b   :  { %342 = vlog2.f32 %v105_v54 }
 0x15c   :  { %v335_v57 = vpop.eup %334 }
 0x15d   :  { %v155_v55 = vpop.xlane.xlu1 %154  ;;  %v107_v56 = vpop.xlane.xlu0 %106  ;;  %v111_v13 = vmul.f32 0.6931472, %v335_v57 }
 0x15e   :  { %344 = vlog2.f32 %v155_v55 }
 0x15f   :  { %346 = vrcp.f32 %v151_v52  ;;  %v120_v27 = vadd.f32 %v111_v13, %v510_v10  ;;  %v191_v52 = vand.u32 2147483647, %v186_v26 }
 0x160   :  { %v337_v58 = vpop.eup %336  ;;  %348 = vlog2.f32 %v107_v56  ;;  %v190_v56 = vand.u32 2147483647, %v185_v34 }
 0x161   :  { %v339_v59 = vpop.eup %338  ;;  %350 = vrcp.f32 %v153_v53  ;;  %v157_v60 = vpop.xlane.xlu1 %156  ;;  %v113_v63 = vmul.f32 0.6931472, %v337_v58 }
 0x162   :  { %v109_v61 = vpop.xlane.xlu0 %108  ;;  %v161_v62 = vmul.f32 0.6931472, %v339_v59  ;;  %352 = vlog2.f32 %v157_v60 }
 0x163   :  { %354 = vrcp.f32 %v155_v55  ;;  %v121_v20 = vadd.f32 %v113_v63, %v518_v16  ;;  %v187_v16 = vsub.f32 %v492_v4, %v494_v5 }
 0x164   :  { %v341_v12 = vpop.eup %340  ;;  %356 = vlog2.f32 %v109_v61  ;;  %v170_v19 = vadd.f32 %v161_v62, %v512_v11 }
 0x165   :  { %v163_v14 = vmul.f32 0.6931472, %v341_v12  ;;  %358 = vrcp.f32 %v157_v60  ;;  %v159_v15 = vpop.xlane.xlu1 %158  ;;  %v343_v18 = vpop.eup %342  ;;  %v192_v6 = vand.u32 2147483647, %v187_v16 }
 0x166   :  { %360 = vlog2.f32 %v159_v15  ;;  %v115_v24 = vmul.f32 0.6931472, %v343_v18  ;;  %v195_v11 = vsub.f32 %v120_v27, %v170_v19 }
 0x167   :  { %v171_v21 = vadd.f32 %v163_v14, %v520_v17  ;;  %362 = vrcp.f32 %v159_v15 }
 0x168   :  { %v345_v25 = vpop.eup %344  ;;  %v122_v17 = vadd.f32 %v115_v24, %v526_v22  ;;  %v200_v1 = vsub.f32 %v195_v11, %v185_v34 }
 0x169   :  { %v347_v30 = vpop.eup %346  ;;  %v196_v31 = vsub.f32 %v121_v20, %v171_v21  ;;  %v165_v32 = vmul.f32 0.6931472, %v345_v25 }
 0x16a   :  { %v349_v33 = vpop.eup %348  ;;  %v176_v53 = vmul.f32 %v347_v30, %v546_v37 }
 0x16b   :  { %v351_v38 = vpop.eup %350  ;;  %v172_v39 = vadd.f32 %v165_v32, %v528_v23  ;;  %v117_v2 = vmul.f32 0.6931472, %v349_v33  ;;  %v201_v10 = vsub.f32 %v196_v31, %v186_v26 }
 0x16c   :  { %v353_v3 = vpop.eup %352  ;;  %v178_v46 = vmul.f32 %v351_v38, %v553_v43  ;;  %v189_v43 = vsub.f32 %v504_v8, %v506_v9  ;;  %v205_v58 = vmul.f32 %v200_v1, %v176_v53 }
 0x16d   :  { %v355_v40 = vpop.eup %354  ;;  %v197_v41 = vsub.f32 %v122_v17, %v172_v39  ;;  %v167_v42 = vmul.f32 0.6931472, %v353_v3  ;;  %v123_v5 = vadd.f32 %v117_v2, %v534_v28  ;;  %v232_v28 = vshrl.u32 %v231_v48, 7 }
 0x16e   :  { %v357_v44 = vpop.eup %356  ;;  %v180_v54 = vmul.f32 %v355_v40, %v556_v45  ;;  %v206_v55 = vmul.f32 %v201_v10, %v178_v46  ;;  %v193_v45 = vand.u32 2147483647, %v188_v0  ;;  %v210_v14 = vadd.f32 %v205_v58, %v190_v56 }
 0x16f   :  { %v359_v50 = vpop.eup %358  ;;  %v202_v4 = vsub.f32 %v197_v41, %v187_v16  ;;  %v173_v22 = vadd.f32 %v167_v42, %v536_v29  ;;  %v119_v23 = vmul.f32 0.6931472, %v357_v44  ;;  %v236_v18 = vadd.s32 32, %v232_v28 }
 0x170   :  { %v361_v51 = vpop.eup %360  ;;  %v182_v61 = vmul.f32 %v359_v50, %v559_v47  ;;  %v211_v63 = vadd.f32 %v206_v55, %v191_v52  ;;  %v194_v19 = vand.u32 2147483647, %v189_v43 }
 0x171   :  { %v198_v7 = vsub.f32 %v123_v5, %v173_v22  ;;  %v169_v57 = vmul.f32 0.6931472, %v361_v51  ;;  %v207_v59 = vmul.f32 %v202_v4, %v180_v54  ;;  %v124_v29 = vadd.f32 %v119_v23, %v542_v35  ;;  %v363_v62 = vpop.eup %362 }
 0x172   :  { %v184_v8 = vmul.f32 %v363_v62, %v562_v49  ;;  %v265_v21 = vadd.f32 %v211_v63, %v210_v14  ;;  %vm248_vm0 = vcmp.lt.s32.totalorder %v236_v18, 37 }
 0x173   :  { %v174_v60 = vadd.f32 %v169_v57, %v544_v36  ;;  %v203_v37 = vsub.f32 %v198_v7, %v188_v0  ;;  %v212_v15 = vadd.f32 %v207_v59, %v192_v6 }
 0x175   :  { %v199_v12 = vsub.f32 %v124_v29, %v174_v60  ;;  %v208_v13 = vmul.f32 %v203_v37, %v182_v61  ;;  %v266_v36 = vadd.f32 %v265_v21, %v212_v15 }
 0x177   :  { %v204_v9 = vsub.f32 %v199_v12, %v189_v43  ;;  %v213_v20 = vadd.f32 %v208_v13, %v193_v45 }
 0x179   :  { %v209_v35 = vmul.f32 %v204_v9, %v184_v8  ;;  %v267_v47 = vadd.f32 %v266_v36, %v213_v20 }
 0x17b   :  { %v214_v24 = vadd.f32 %v209_v35, %v194_v19 }
 0x17d   :  { %v264_v25 = vsel %vm248_vm0, %v214_v24, 0.0 }
 0x17e   :  { %v268_v26 = vadd.f32 %v267_v47, %v264_v25 }
 0x180   :  { %275 = vadd.xlane.f32.xlu0 %v268_v26 }
 0x20d   :  { %v276_v27 = vpop.xlane.xlu0 %275 }
 0x20e   :  { %v277_v30 = vrot.slane %v276_v27, 4 }
 0x210   :  { %v278_v31 = vadd.f32 %v277_v30, %v276_v27 }
 0x212   :  { %v279_v32 = vrot.slane %v278_v31, 2 }
 0x214   :  { %v280_v33 = vadd.f32 %v279_v32, %v278_v31 }
 0x216   :  { %v281_v34 = vrot.slane %v280_v33, 1 }
 0x218   :  { %v282_v11 = vadd.f32 %v281_v34, %v280_v33 }
 0x21a   :  { %307 = vpush %v282_v11 }
 0x24b   :  { %s308_s7 = spop %307 }
 0x24c   :  { %s284_s8 = smul.f32 0.00010557433, %s308_s7 }
 0x24e   :  { %v285_v49 = vstv %s284_s8 }
 0x24f   :  { %286 = vst [vmem:[#allocation8] sm:$0xff] %v285_v49 }
 0x250   :  { %419 = shalt.err (!%p416_p6)
}
 0x251   :  { %s420_s12 = scalar_lea.hbm %s604_s2, 128 }
 0x252   :  { %p421_p7 = scmp.ne.s32.totalorder %s604_s2, %s420_s12  ;;  %p424_p8 = scmp.lt.u32.totalorder %s420_s12, %s604_s2 }
 0x254   :  { %p426_p9 = pnand %p424_p8, %p421_p7 }
 0x256   :  { %429 = shalt.err (!%p426_p9)
}
 0x257   :  { %296 = dma.vmem_to_hbm [thread:$0]  %s294_s6, 128, %s604_s2, [#allocation5]  }
 0x258   :  { %434 = dma.done.wait [#allocation5], 128  }
 0x259   :  { %435 = vsyncadd [#allocation5], 4294967168 }
 0x25a   :  { %300 = vsyncpa [#allocation4], 1 }
 0x25b   :  { %301 = vsyncpa [#allocation7], 1 }
 0x25c   :  { %302 = vsyncpa [#allocation5], 1 }

</bundles_post_ra>
